<compile_context>
chip_gen: v6e
topology: v6e:2x2x1
jax: 0.10.0
libtpu: 0.0.40
codegen_flags: <defaults>
</compile_context>

<pallas_src>
import functools
import math

import jax
import jax.numpy as jnp
from jax.experimental import pallas as pl
from jax.experimental.pallas import tpu as pltpu


def _round_up(x, m):
    return (x + m - 1) // m * m


def _sigmoid_via_tanh(x):
    # Single EUP (tanh) push instead of exp + reciprocal.
    return 0.5 * jnp.tanh(0.5 * x) + 0.5


def _tpu_vmem_capacity():
    try:
        return int(pltpu.get_tpu_info().vmem_capacity_bytes)
    except Exception:
        return 128 * 1024 * 1024


def _device_kind():
    try:
        return jax.devices()[0].device_kind.lower()
    except Exception:
        return ""


def _gru_kernel(*refs, size, size_p, update_bias, norm, eps, fuse_k):
    if fuse_k:
        if norm:
            x_ref, h_ref, w_ref, g_ref, b_ref, o_ref, xh_ref = refs
        else:
            x_ref, h_ref, w_ref, o_ref, xh_ref = refs
        # Assemble [h | x] into a lane-aligned VMEM tile. h occupies columns
        # [0:size_p] (size_p is a multiple of 128 -> aligned store), x starts
        # at a 128-multiple offset. Every scratch column is written each step,
        # so no stale VMEM garbage ever reaches the MXU. One dot instead of
        # two tiny-K dots (halves MXU push/pop overhead for small K).
        xh_ref[:, :size_p] = h_ref[...]
        xh_ref[:, size_p:] = x_ref[...]
        parts = jnp.dot(xh_ref[...], w_ref[...],
                        preferred_element_type=jnp.float32)
    else:
        if norm:
            x_ref, h_ref, wx_ref, wh_ref, g_ref, b_ref, o_ref = refs
        else:
            x_ref, h_ref, wx_ref, wh_ref, o_ref = refs
        # Two MXU dots in the native input dtype, f32 accumulation. No concat.
        parts = jnp.dot(x_ref[...], wx_ref[...],
                        preferred_element_type=jnp.float32)
        parts = parts + jnp.dot(h_ref[...], wh_ref[...],
                                preferred_element_type=jnp.float32)

    if norm:
        # NOTE: the analytic variance correction below relies on the padded
        # gate columns of `parts` being *exactly* zero pre-norm. This holds
        # because padded weight columns/rows and padded h columns are exact
        # zeros and accumulation is in f32. Do not change the padding value or
        # accumulation dtype without revisiting this.
        n_true = 3 * size
        inv_n = 1.0 / float(n_true)
        mean = jnp.sum(parts, axis=-1, keepdims=True) * inv_n
        diff = parts - mean
        sq = jnp.sum(diff * diff, axis=-1, keepdims=True)
        if size_p != size:
            # Each of the 3*(size_p - size) padded columns contributes exactly
            # mean**2 to sq; subtract analytically (one FMA per row) instead
            # of an iota/modulo mask recomputed every grid step.
            sq = sq - (3.0 * (size_p - size)) * (mean * mean)
        var = sq * inv_n
        parts = diff * jax.lax.rsqrt(var + eps)
        parts = parts * g_ref[...] + b_ref[...]

    # Lane-aligned gate slabs (size_p is a multiple of 128).
    reset = _sigmoid_via_tanh(parts[:, 0:size_p])
    cand = jnp.tanh(reset * parts[:, size_p:2 * size_p])
    update = _sigmoid_via_tanh(parts[:, 2 * size_p:3 * size_p] + update_bias)

    h = h_ref[...].astype(jnp.float32)
    # h + u*(c - h) == u*c + (1-u)*h, one fewer VPU mul/sub per element.
    o_ref[...] = (h + update * (cand - h)).astype(o_ref.dtype)


def prepare_gru_cell(w_t, ln_gamma=None, ln_beta=None, *, inp_size, size,
                     norm=False, dtype=None, fuse_k=None):
    """One-time weight layout prep (hoisted out of the per-step call path).

    w_t: (inp_size + size, 3*size) == nn.Linear(inp+size, 3*size).weight.T
    """
    D = inp_size + size
    assert w_t.shape == (D, 3 * size)
    if dtype is None:
        dtype = w_t.dtype
    size_p = _round_up(size, 128)

    def pad_gates(w):                       # (K, 3*size) -> (K, 3*size_p)
        K = w.shape[0]
        w3 = jnp.pad(w.reshape(K, 3, size),
                     ((0, 0), (0, 0), (0, size_p - size)))
        return w3.reshape(K, 3 * size_p)

    wx = pad_gates(w_t[:inp_size, :]).astype(dtype)               # (inp, 3sp)
    wh = pad_gates(w_t[inp_size:, :])
    wh = jnp.pad(wh, ((0, size_p - size), (0, 0))).astype(dtype)  # (sp, 3sp)

    if fuse_k is None:
        # Single fused dot only when K is small enough that two separate dots
        # would under-feed the MXU; for large K keep the two-dot form.
        fuse_k = (size_p + inp_size) <= 512

    prep = dict(inp_size=inp_size, size=size, size_p=size_p, dtype=dtype,
                norm=bool(norm), fuse_k=bool(fuse_k))
    if fuse_k:
        prep["w_full"] = jnp.concatenate([wh, wx], axis=0)  # (sp+inp, 3sp)
    else:
        prep["wx"] = wx
        prep["wh"] = wh
    if norm:
        assert ln_gamma is not None and ln_beta is not None

        def pad_ln(v):
            v3 = jnp.reshape(v, (1, 3, size)).astype(jnp.float32)
            v3 = jnp.pad(v3, ((0, 0), (0, 0), (0, size_p - size)))
            return v3.reshape(1, 3 * size_p)

        prep["gamma"] = pad_ln(ln_gamma)
        prep["beta"] = pad_ln(ln_beta)
    return prep


def gru_cell_forward(inputs, state, w_t=None, ln_gamma=None, ln_beta=None, *,
                     size, update_bias=-1.0, norm=False, eps=1e-3, bm=None,
                     prepared=None, fuse_k=None):
    """Pallas GRUCell forward.

    inputs:  (B, inp_size)
    state:   (B, size)            (the tensor in `state[0]` of the torch API)
    returns: (B, size) new hidden state
    """
    B, inp_size = inputs.shape
    assert state.shape == (B, size)

    if prepared is None:
        prepared = prepare_gru_cell(w_t, ln_gamma, ln_beta, inp_size=inp_size,
                                    size=size, norm=norm, dtype=inputs.dtype,
                                    fuse_k=fuse_k)
    assert prepared["inp_size"] == inp_size and prepared["size"] == size
    assert prepared["norm"] == norm
    size_p = prepared["size_p"]
    fuse_k = prepared["fuse_k"]
    dtype = prepared["dtype"]

    itemsize = jnp.dtype(dtype).itemsize
    sub = 16 if itemsize == 2 else 8            # native sublane tile
    K_rows = size_p + inp_size
    w_bytes = K_rows * 3 * size_p * itemsize    # single-buffered resident wts

    vmem_cap = _tpu_vmem_capacity()
    budget = (vmem_cap * 3) // 4                # ~96 MiB v5e/v6e, ~48 MiB v7x
    kind = _device_kind()

    # TODO(synk): if w_bytes > budget (huge hidden sizes), switch to K/N grid
    #             tiling instead of keeping the whole weight slab resident.

    if bm is None:
        # v5e's MXU is 128x128 -> cap f32 bm at 128 there; 256 elsewhere.
        bm = 128 if (itemsize == 4 and "v5" in kind) else 256
        while bm > sub:
            io = 2 * bm * (inp_size + 2 * size_p) * itemsize   # x/h/out dbl-buf
            xh_scr = bm * K_rows * itemsize if fuse_k else 0
            temps = 8 * bm * 3 * size_p * 4                    # f32 temporaries
            if w_bytes + io + xh_scr + temps <= budget:
                break
            bm //= 2
        bm = max(bm, sub)
    if B < bm:
        bm = _round_up(B, sub)
    B_p = _round_up(B, bm)
    # v7x has 2 TensorCores: give the parallel batch axis at least 2 steps.
    if "v7" in kind and B_p // bm < 2 and B_p > sub:
        bm = max(sub, _round_up(-(-B_p // 2), sub))
        B_p = _round_up(B, bm)
    grid = (B_p // bm,)

    # ---- batch/state padding (cheap, per-step) ----
    x_p = inputs if B_p == B else jnp.pad(inputs, ((0, B_p - B), (0, 0)))
    h_p = state
    if B_p != B or size_p != size:
        h_p = jnp.pad(state, ((0, B_p - B), (0, size_p - size)))
    x_p = x_p.astype(dtype)
    h_p = h_p.astype(dtype)

    kernel = functools.partial(_gru_kernel, size=size, size_p=size_p,
                               update_bias=float(update_bias), norm=norm,
                               eps=float(eps), fuse_k=fuse_k)

    footprint = (w_bytes
                 + 2 * bm * (inp_size + 2 * size_p) * itemsize
                 + (bm * K_rows * itemsize if fuse_k else 0)
                 + 8 * bm * 3 * size_p * 4
                 + 4 * 3 * size_p * 4
                 + 2 * 1024 * 1024)
    vmem_limit = int(min(vmem_cap, max(footprint, 32 * 1024 * 1024)))

    cost = pl.CostEstimate(
        flops=int(2 * B_p * K_rows * 3 * size_p),
        transcendentals=int(3 * B_p * size_p),
        bytes_accessed=int(w_bytes + B_p * (inp_size + 2 * size_p) * itemsize),
    )

    def build_in_specs(single_buffer_weights):
        def resident(shape):
            # Grid-invariant block: single-buffer it (constant index_map), so
            # the dominant VMEM consumer is counted once, not twice.
            if single_buffer_weights:
                return pl.BlockSpec(shape, lambda i: (0, 0),
                                    pipeline_mode=pl.Buffered(1))
            return pl.BlockSpec(shape, lambda i: (0, 0))

        specs = [pl.BlockSpec((bm, inp_size), lambda i: (i, 0)),   # x tile
                 pl.BlockSpec((bm, size_p), lambda i: (i, 0))]     # h tile
        if fuse_k:
            specs.append(resident((K_rows, 3 * size_p)))           # [W_h;W_x]
        else:
            specs.append(resident((inp_size, 3 * size_p)))         # W_x
            specs.append(resident((size_p, 3 * size_p)))           # W_h
        if norm:
            specs.append(resident((1, 3 * size_p)))                # gamma
            specs.append(resident((1, 3 * size_p)))                # beta
        return specs

    args = [x_p, h_p]
    if fuse_k:
        args.append(prepared["w_full"])
    else:
        args += [prepared["wx"], prepared["wh"]]
    if norm:
        args += [prepared["gamma"], prepared["beta"]]

    scratch_shapes = []
    if fuse_k:
        scratch_shapes.append(pltpu.VMEM((bm, K_rows), dtype))

    def run(single_buffer_weights):
        return pl.pallas_call(
            kernel,
            out_shape=jax.ShapeDtypeStruct((B_p, size_p), dtype),
            grid_spec=pltpu.PrefetchScalarGridSpec(
                num_scalar_prefetch=0,
                grid=grid,
                in_specs=build_in_specs(single_buffer_weights),
                out_specs=pl.BlockSpec((bm, size_p), lambda i: (i, 0)),
                scratch_shapes=scratch_shapes,
            ),
            compiler_params=pltpu.CompilerParams(
                dimension_semantics=("parallel",),
                vmem_limit_bytes=vmem_limit),
            cost_estimate=cost,
        )(*args)

    try:
        out = run(True)       # weights single-buffered
    except Exception:
        out = run(False)      # fallback if pipeline_mode=Buffered(1) rejected

    if B_p != B or size_p != size:
        out = out[:B, :size]
    return out


def gru_cell_reference(inputs, state, w_t, ln_gamma, ln_beta, *,
                       size, update_bias=-1.0, norm=False, eps=1e-3):
    """Pure-JAX reference matching the torch module semantics."""
    parts = jnp.concatenate([inputs, state], axis=-1) @ w_t
    if norm:
        mean = jnp.mean(parts, -1, keepdims=True)
        var = jnp.mean((parts - mean) ** 2, -1, keepdims=True)
        parts = (parts - mean) / jnp.sqrt(var + eps)
        parts = parts * ln_gamma + ln_beta
    reset, cand, update = jnp.split(parts, 3, axis=-1)
    reset = jax.nn.sigmoid(reset)
    cand = jnp.tanh(reset * cand)
    update = jax.nn.sigmoid(update + update_bias)
    return update * cand + (1.0 - update) * state


if __name__ == "__main__":
    # Small shapes consistent with the module's forward.
    B = 8          # batch
    inp_size = 32  # GRU input dim
    size = 32      # GRU hidden dim

    key = jax.random.PRNGKey(0)
    k_x, k_h, k_w = jax.random.split(key, 3)

    x = jax.random.normal(k_x, (B, inp_size), dtype=jnp.float32)
    h = jax.random.normal(k_h, (B, size), dtype=jnp.float32)

    # nn.Linear(inp_size + size, 3*size, bias=False): weight (3*size, inp+size)
    fan_in = inp_size + size
    bound = 1.0 / math.sqrt(fan_in)
    w = jax.random.uniform(k_w, (3 * size, fan_in),
                           minval=-bound, maxval=bound, dtype=jnp.float32)
    w_t = w.T

    ln_gamma = jnp.ones((1, 3 * size), jnp.float32)
    ln_beta = jnp.zeros((1, 3 * size), jnp.float32)

    # Weight layout prep hoisted out of the per-step path (done once).
    prep = prepare_gru_cell(w_t, inp_size=inp_size, size=size, norm=False,
                            dtype=jnp.float32)

    # norm=False path (fused small-K single-dot path).
    out = gru_cell_forward(x, h, prepared=prep, size=size,
                           update_bias=-1.0, norm=False)
    jax.block_until_ready(out)
    ref = gru_cell_reference(x, h, w_t, ln_gamma, ln_beta,
                             size=size, update_bias=-1.0, norm=False)
    assert out.shape == (B, size)
    assert jnp.allclose(out, ref, atol=1e-5, rtol=1e-5)

    # norm=True path, exercising the two-dot (non-fused) form as well.
    out_n = gru_cell_forward(x, h, w_t, ln_gamma, ln_beta, size=size,
                             update_bias=-1.0, norm=True, fuse_k=False)
    jax.block_until_ready(out_n)
    ref_n = gru_cell_reference(x, h, w_t, ln_gamma, ln_beta,
                               size=size, update_bias=-1.0, norm=True)
    assert jnp.allclose(out_n, ref_n, atol=1e-4, rtol=1e-4)

    # bf16 + ragged-batch smoke test (dtype-aware tile + batch padding).
    xb = x[:5].astype(jnp.bfloat16)
    hb = h[:5].astype(jnp.bfloat16)
    out_b = gru_cell_forward(xb, hb, w_t.astype(jnp.bfloat16), size=size,
                             update_bias=-1.0, norm=False)
    jax.block_until_ready(out_b)
    assert out_b.shape == (5, size)
    ref_b = gru_cell_reference(x[:5], h[:5], w_t, ln_gamma, ln_beta,
                               size=size, update_bias=-1.0, norm=False)
    assert jnp.allclose(out_b.astype(jnp.float32), ref_b, atol=5e-2, rtol=5e-2)

    print("KERNEL_OK")
</pallas_src>

<mosaic_0001>
module attributes {stable_mosaic.version = 11 : i64} {
  func.func @_gru_kernel(%arg0: i32, %arg1: memref<8x32xf32, #tpu.memory_space<vmem>>, %arg2: memref<8x128xf32, #tpu.memory_space<vmem>>, %arg3: memref<160x384xf32, #tpu.memory_space<vmem>>, %arg4: memref<8x128xf32, #tpu.memory_space<vmem>>, %arg5: memref<8x160xf32, #tpu.memory_space<vmem>>) attributes {dimension_semantics = [#tpu.dimension_semantics<parallel>], iteration_bounds = array<i64: 1>, scalar_prefetch = 0 : i64, scratch_operands = 1 : i64, tpu.core_type = #tpu.core_type<tc>, window_params = [{transform_indices = @transform_0, window_bounds = array<i64: 8, 32>}, {transform_indices = @transform_1, window_bounds = array<i64: 8, 128>}, {pipeline_mode = #tpu.pipeline_mode<synchronous>, transform_indices = @transform_2, window_bounds = array<i64: 160, 384>}, {transform_indices = @transform_3, window_bounds = array<i64: 8, 128>}]} {
    %c0 = arith.constant 0 : index
    %c0_0 = arith.constant 0 : index
    %0 = vector.load %arg2[%c0, %c0_0] : memref<8x128xf32, #tpu.memory_space<vmem>>, vector<8x128xf32>
    %c0_1 = arith.constant 0 : index
    %c0_2 = arith.constant 0 : index
    %1 = vector.load %arg5[%c0_1, %c0_2] : memref<8x160xf32, #tpu.memory_space<vmem>>, vector<8x128xf32>
    tpu.vector_store %arg5[%c0_1, %c0_2], %0 {strides = array<i32>} : memref<8x160xf32, #tpu.memory_space<vmem>>, vector<8x128xf32>,
    %c0_3 = arith.constant 0 : index
    %c0_4 = arith.constant 0 : index
    %2 = vector.load %arg1[%c0_3, %c0_4] : memref<8x32xf32, #tpu.memory_space<vmem>>, vector<8x32xf32>
    %c0_5 = arith.constant 0 : index
    %c128 = arith.constant 128 : index
    %3 = vector.load %arg5[%c0_5, %c128] : memref<8x160xf32, #tpu.memory_space<vmem>>, vector<8x32xf32>
    tpu.vector_store %arg5[%c0_5, %c128], %2 {strides = array<i32>} : memref<8x160xf32, #tpu.memory_space<vmem>>, vector<8x32xf32>,
    %c0_6 = arith.constant 0 : index
    %c0_7 = arith.constant 0 : index
    %4 = vector.load %arg5[%c0_6, %c0_7] : memref<8x160xf32, #tpu.memory_space<vmem>>, vector<8x160xf32>
    %c0_8 = arith.constant 0 : index
    %c0_9 = arith.constant 0 : index
    %5 = vector.load %arg3[%c0_8, %c0_9] : memref<160x384xf32, #tpu.memory_space<vmem>>, vector<160x384xf32>
    %cst = arith.constant dense<0.000000e+00> : vector<8x384xf32>
    %6 = tpu.matmul %4, %5, %cst {dimension_numbers = #tpu.dot_dimension_numbers<[1], [0], [0], [1], [0, 0, 1, 1], [], []>} : vector<8x160xf32>, vector<160x384xf32>, vector<8x384xf32> -> vector<8x384xf32>
    %7 = vector.extract_strided_slice %6 {offsets = [0, 0], sizes = [8, 128], strides = [1, 1]} : vector<8x384xf32> to vector<8x128xf32>
    %cst_10 = arith.constant 5.000000e-01 : f32
    %8 = vector.broadcast %cst_10 : f32 to vector<8x128xf32>
    %9 = arith.mulf %8, %7 : vector<8x128xf32>
    %10 = math.tanh %9 : vector<8x128xf32>
    %cst_11 = arith.constant 5.000000e-01 : f32
    %11 = vector.broadcast %cst_11 : f32 to vector<8x128xf32>
    %12 = arith.mulf %11, %10 : vector<8x128xf32>
    %cst_12 = arith.constant 5.000000e-01 : f32
    %13 = vector.broadcast %cst_12 : f32 to vector<8x128xf32>
    %14 = arith.addf %12, %13 : vector<8x128xf32>
    %15 = vector.extract_strided_slice %6 {offsets = [0, 128], sizes = [8, 128], strides = [1, 1]} : vector<8x384xf32> to vector<8x128xf32>
    %16 = arith.mulf %14, %15 : vector<8x128xf32>
    %17 = math.tanh %16 : vector<8x128xf32>
    %18 = vector.extract_strided_slice %6 {offsets = [0, 256], sizes = [8, 128], strides = [1, 1]} : vector<8x384xf32> to vector<8x128xf32>
    %cst_13 = arith.constant -1.000000e+00 : f32
    %19 = vector.broadcast %cst_13 : f32 to vector<8x128xf32>
    %20 = arith.addf %18, %19 : vector<8x128xf32>
    %cst_14 = arith.constant 5.000000e-01 : f32
    %21 = vector.broadcast %cst_14 : f32 to vector<8x128xf32>
    %22 = arith.mulf %21, %20 : vector<8x128xf32>
    %23 = math.tanh %22 : vector<8x128xf32>
    %cst_15 = arith.constant 5.000000e-01 : f32
    %24 = vector.broadcast %cst_15 : f32 to vector<8x128xf32>
    %25 = arith.mulf %24, %23 : vector<8x128xf32>
    %cst_16 = arith.constant 5.000000e-01 : f32
    %26 = vector.broadcast %cst_16 : f32 to vector<8x128xf32>
    %27 = arith.addf %25, %26 : vector<8x128xf32>
    %c0_17 = arith.constant 0 : index
    %c0_18 = arith.constant 0 : index
    %28 = vector.load %arg2[%c0_17, %c0_18] : memref<8x128xf32, #tpu.memory_space<vmem>>, vector<8x128xf32>
    %29 = arith.subf %17, %28 : vector<8x128xf32>
    %30 = arith.mulf %27, %29 : vector<8x128xf32>
    %31 = arith.addf %28, %30 : vector<8x128xf32>
    %c0_19 = arith.constant 0 : index
    %c0_20 = arith.constant 0 : index
    %32 = vector.load %arg4[%c0_19, %c0_20] : memref<8x128xf32, #tpu.memory_space<vmem>>, vector<8x128xf32>
    tpu.vector_store %arg4[%c0_19, %c0_20], %31 {strides = array<i32>} : memref<8x128xf32, #tpu.memory_space<vmem>>, vector<8x128xf32>,
    return
  }
  func.func @transform_0(%arg0: i32) -> (i32, i32) {
    %c0_i32 = arith.constant 0 : i32
    %c0_i32_0 = arith.constant 0 : i32
    return %arg0, %c0_i32 : i32, i32
  }
  func.func @transform_1(%arg0: i32) -> (i32, i32) {
    %c0_i32 = arith.constant 0 : i32
    %c0_i32_0 = arith.constant 0 : i32
    return %arg0, %c0_i32 : i32, i32
  }
  func.func @transform_2(%arg0: i32) -> (i32, i32) {
    %c0_i32 = arith.constant 0 : i32
    %c0_i32_0 = arith.constant 0 : i32
    %c0_i32_1 = arith.constant 0 : i32
    return %c0_i32, %c0_i32_0 : i32, i32
  }
  func.func @transform_3(%arg0: i32) -> (i32, i32) {
    %c0_i32 = arith.constant 0 : i32
    %c0_i32_0 = arith.constant 0 : i32
    return %arg0, %c0_i32 : i32, i32
  }
}

module attributes {stable_mosaic.version = 11 : i64} {
  func.func @_gru_kernel(%arg0: i32, %arg1: memref<8x32xf32, #tpu.memory_space<vmem>>, %arg2: memref<8x128xf32, #tpu.memory_space<vmem>>, %arg3: memref<160x384xf32, #tpu.memory_space<vmem>>, %arg4: memref<8x128xf32, #tpu.memory_space<vmem>>, %arg5: memref<8x160xf32, #tpu.memory_space<vmem>>) attributes {dimension_semantics = [#tpu.dimension_semantics<parallel>], iteration_bounds = array<i64: 1>, scalar_prefetch = 0 : i64, scratch_operands = 1 : i64, tpu.core_type = #tpu.core_type<tc>, window_params = [{transform_indices = @transform_0, window_bounds = array<i64: 8, 32>}, {transform_indices = @transform_1, window_bounds = array<i64: 8, 128>}, {pipeline_mode = #tpu.pipeline_mode<synchronous>, transform_indices = @transform_2, window_bounds = array<i64: 160, 384>}, {transform_indices = @transform_3, window_bounds = array<i64: 8, 128>}]} {
    %c0 = arith.constant 0 : index
    %c0_0 = arith.constant 0 : index
    %0 = vector.load %arg2[%c0, %c0_0] : memref<8x128xf32, #tpu.memory_space<vmem>>, vector<8x128xf32>
    %c0_1 = arith.constant 0 : index
    %c0_2 = arith.constant 0 : index
    %1 = vector.load %arg5[%c0_1, %c0_2] : memref<8x160xf32, #tpu.memory_space<vmem>>, vector<8x128xf32>
    tpu.vector_store %arg5[%c0_1, %c0_2], %0 {strides = array<i32>} : memref<8x160xf32, #tpu.memory_space<vmem>>, vector<8x128xf32>,
    %c0_3 = arith.constant 0 : index
    %c0_4 = arith.constant 0 : index
    %2 = vector.load %arg1[%c0_3, %c0_4] : memref<8x32xf32, #tpu.memory_space<vmem>>, vector<8x32xf32>
    %c0_5 = arith.constant 0 : index
    %c128 = arith.constant 128 : index
    %3 = vector.load %arg5[%c0_5, %c128] : memref<8x160xf32, #tpu.memory_space<vmem>>, vector<8x32xf32>
    tpu.vector_store %arg5[%c0_5, %c128], %2 {strides = array<i32>} : memref<8x160xf32, #tpu.memory_space<vmem>>, vector<8x32xf32>,
    %c0_6 = arith.constant 0 : index
    %c0_7 = arith.constant 0 : index
    %4 = vector.load %arg5[%c0_6, %c0_7] : memref<8x160xf32, #tpu.memory_space<vmem>>, vector<8x160xf32>
    %c0_8 = arith.constant 0 : index
    %c0_9 = arith.constant 0 : index
    %5 = vector.load %arg3[%c0_8, %c0_9] : memref<160x384xf32, #tpu.memory_space<vmem>>, vector<160x384xf32>
    %cst = arith.constant dense<0.000000e+00> : vector<8x384xf32>
    %6 = tpu.matmul %4, %5, %cst {dimension_numbers = #tpu.dot_dimension_numbers<[1], [0], [0], [1], [0, 0, 1, 1], [], []>} : vector<8x160xf32>, vector<160x384xf32>, vector<8x384xf32> -> vector<8x384xf32>
    %7 = vector.extract_strided_slice %6 {offsets = [0, 0], sizes = [8, 128], strides = [1, 1]} : vector<8x384xf32> to vector<8x128xf32>
    %cst_10 = arith.constant 5.000000e-01 : f32
    %8 = vector.broadcast %cst_10 : f32 to vector<8x128xf32>
    %9 = arith.mulf %8, %7 : vector<8x128xf32>
    %10 = math.tanh %9 : vector<8x128xf32>
    %cst_11 = arith.constant 5.000000e-01 : f32
    %11 = vector.broadcast %cst_11 : f32 to vector<8x128xf32>
    %12 = arith.mulf %11, %10 : vector<8x128xf32>
    %cst_12 = arith.constant 5.000000e-01 : f32
    %13 = vector.broadcast %cst_12 : f32 to vector<8x128xf32>
    %14 = arith.addf %12, %13 : vector<8x128xf32>
    %15 = vector.extract_strided_slice %6 {offsets = [0, 128], sizes = [8, 128], strides = [1, 1]} : vector<8x384xf32> to vector<8x128xf32>
    %16 = arith.mulf %14, %15 : vector<8x128xf32>
    %17 = math.tanh %16 : vector<8x128xf32>
    %18 = vector.extract_strided_slice %6 {offsets = [0, 256], sizes = [8, 128], strides = [1, 1]} : vector<8x384xf32> to vector<8x128xf32>
    %cst_13 = arith.constant -1.000000e+00 : f32
    %19 = vector.broadcast %cst_13 : f32 to vector<8x128xf32>
    %20 = arith.addf %18, %19 : vector<8x128xf32>
    %cst_14 = arith.constant 5.000000e-01 : f32
    %21 = vector.broadcast %cst_14 : f32 to vector<8x128xf32>
    %22 = arith.mulf %21, %20 : vector<8x128xf32>
    %23 = math.tanh %22 : vector<8x128xf32>
    %cst_15 = arith.constant 5.000000e-01 : f32
    %24 = vector.broadcast %cst_15 : f32 to vector<8x128xf32>
    %25 = arith.mulf %24, %23 : vector<8x128xf32>
    %cst_16 = arith.constant 5.000000e-01 : f32
    %26 = vector.broadcast %cst_16 : f32 to vector<8x128xf32>
    %27 = arith.addf %25, %26 : vector<8x128xf32>
    %c0_17 = arith.constant 0 : index
    %c0_18 = arith.constant 0 : index
    %28 = vector.load %arg2[%c0_17, %c0_18] : memref<8x128xf32, #tpu.memory_space<vmem>>, vector<8x128xf32>
    %29 = arith.subf %17, %28 : vector<8x128xf32>
    %30 = arith.mulf %27, %29 : vector<8x128xf32>
    %31 = arith.addf %28, %30 : vector<8x128xf32>
    %c0_19 = arith.constant 0 : index
    %c0_20 = arith.constant 0 : index
    %32 = vector.load %arg4[%c0_19, %c0_20] : memref<8x128xf32, #tpu.memory_space<vmem>>, vector<8x128xf32>
    tpu.vector_store %arg4[%c0_19, %c0_20], %31 {strides = array<i32>} : memref<8x128xf32, #tpu.memory_space<vmem>>, vector<8x128xf32>,
    return
  }
  func.func @transform_0(%arg0: i32) -> (i32, i32) {
    %c0_i32 = arith.constant 0 : i32
    %c0_i32_0 = arith.constant 0 : i32
    return %arg0, %c0_i32 : i32, i32
  }
  func.func @transform_1(%arg0: i32) -> (i32, i32) {
    %c0_i32 = arith.constant 0 : i32
    %c0_i32_0 = arith.constant 0 : i32
    return %arg0, %c0_i32 : i32, i32
  }
  func.func @transform_2(%arg0: i32) -> (i32, i32) {
    %c0_i32 = arith.constant 0 : i32
    %c0_i32_0 = arith.constant 0 : i32
    %c0_i32_1 = arith.constant 0 : i32
    return %c0_i32, %c0_i32_0 : i32, i32
  }
  func.func @transform_3(%arg0: i32) -> (i32, i32) {
    %c0_i32 = arith.constant 0 : i32
    %c0_i32_0 = arith.constant 0 : i32
    return %arg0, %c0_i32 : i32, i32
  }
}

</mosaic_0001>

<bundles_post_ra>
// kernel: tpu_custom_call.1
= control target key start
LH: loop header
LB: loop body
LE: loop exit
PB: predicated region body
PF: predicated region fallthrough
CT: control target
= control target key end

     0   :  { %8 = vsyncpa [#allocation4], 0  ;;  %s464_s0 = inlined_call_operand.hbm [shape: f32[8,32], index: 0, kind: input, shape index: {}]   ;;  %s465_s1 = inlined_call_operand.hbm [shape: f32[8,128], index: 1, kind: input, shape index: {}]   ;;  %s466_s2 = inlined_call_operand.hbm [shape: f32[160,384], index: 2, kind: input, shape index: {}]   ;;  %s467_s3 = inlined_call_operand.hbm [shape: f32[8,128], index: 3, kind: output, shape index: {}]  }
   0x1   :  { %9 = vsyncpa [#allocation7], 0 }
   0x2   :  { %10 = vsyncpa [#allocation5], 0  ;;  %s396_s12 = smov [#allocation6]   ;;  %s397_s14 = smov [#allocation3]  }
   0x3   :  { %s27_s13 = sshll.u32 %s396_s12, 4  ;;  %s17_s15 = sshll.u32 %s397_s14, 4  ;;  %s28_s13 = int_to_ptr.vmem [resolvable:$true] %s27_s13  ;;  %s18_s15 = int_to_ptr.vmem [resolvable:$true] %s17_s15 }
   0x4   :  { %s318_s16 = scalar_lea.vmem %s28_s13, 128  ;;  %p323_p1 = scmp.lt.s32.totalorder %s28_s13, %s28_s13 }
   0x5   :  { %p319_p0 = scmp.ne.s32.totalorder %s28_s13, %s318_s16  ;;  %p324_p2 = scmp.lt.s32.totalorder %s318_s16, %s318_s16 }
   0x7   :  { %p325_p3 = por %p324_p2, %p323_p1 }
   0x9   :  { %p326_p4 = pnand %p325_p3, %p319_p0 }
   0xb   :  { %329 = shalt.err (!%p326_p4)
}
   0xc   :  { %30 = dma.hbm_to_vmem [thread:$0]  %s465_s1, 128, %s28_s13, [#allocation7]  }
   0xd   :  { %s338_s19 = scalar_lea.vmem %s18_s15, 128  ;;  %p343_p6 = scmp.lt.s32.totalorder %s18_s15, %s18_s15 }
   0xe   :  { %p339_p5 = scmp.ne.s32.totalorder %s18_s15, %s338_s19  ;;  %p344_p7 = scmp.lt.s32.totalorder %s338_s19, %s338_s19 }
  0x10   :  { %p345_p8 = por %p344_p7, %p343_p6 }
  0x12   :  { %p346_p9 = pnand %p345_p8, %p339_p5 }
  0x14   :  { %349 = shalt.err (!%p346_p9)
}
  0x15   :  { %20 = dma.hbm_to_vmem [thread:$0]  %s464_s0, 128, %s18_s15, [#allocation4]  }
  0x16   :  { %s398_s22 = smov [#allocation8]  }
  0x17   :  { %s36_s23 = sshll.u32 %s398_s22, 4  ;;  %s37_s23 = int_to_ptr.vmem [resolvable:$true] %s36_s23 }
  0x18   :  { %s358_s24 = scalar_lea.vmem %s37_s23, 7680  ;;  %p363_p11 = scmp.lt.s32.totalorder %s37_s23, %s37_s23 }
  0x19   :  { %p359_p10 = scmp.ne.s32.totalorder %s37_s23, %s358_s24  ;;  %p364_p12 = scmp.lt.s32.totalorder %s358_s24, %s358_s24 }
  0x1b   :  { %p365_p13 = por %p364_p12, %p363_p11 }
  0x1d   :  { %p366_p0 = pnand %p365_p13, %p359_p10 }
  0x1f   :  { %369 = shalt.err (!%p366_p0)
}
  0x20   :  { %s399_s1 = smov 384   ;;  %s400_s25 = smov 24  }
  0x21   :  { %42 = dma.hbm_to_vmem [thread:$0]  %s466_s2, 7680, %s37_s23, [#allocation7], %s399_s1, %s399_s1, %s400_s25  }
  0x22   :  { %390 = dma.done.wait [#allocation4], 128  }
  0x23   :  { %391 = vsyncadd [#allocation4], 4294967168 }
  0x24   :  { %392 = dma.done.wait [#allocation7], 7808  }
  0x25   :  { %393 = vsyncadd [#allocation7], 4294959488  ;;  %v401_v0 = vmov 0.0   ;;  %v105_v1 = vld [vmem:[#allocation8 + $0x170] sm:$0xff]  ;;  %v104_v2 = vld [vmem:[#allocation8 + $0x168] sm:$0xff]  ;;  %vm55_vm0 = vcmask 261120  }
  0x26   :  { %193 = vmatprep.subr.mxu1 %v401_v0  ;;  %v102_v3 = vld [vmem:[#allocation8 + $0x158] sm:$0xff]  ;;  %122 = vmatprep.subr.mxu0 %v105_v1  ;;  %v101_v4 = vld [vmem:[#allocation8 + $0x150] sm:$0xff]  ;;  %v99_v5 = vld [vmem:[#allocation8 + $0x140] sm:$0xff]  ;;  %s402_s0 = smov [#allocation9]  }
  0x27   :  { %123 = vmatpush1.msra.mxu0 %v104_v2  ;;  %v98_v6 = vld [vmem:[#allocation8 + $0x138] sm:$0xff]  ;;  %v96_v7 = vld [vmem:[#allocation8 + $0x128] sm:$0xff]  ;;  %v95_v8 = vld [vmem:[#allocation8 + $0x120] sm:$0xff]  ;;  %s285_s2 = sshll.u32 %s402_s0, 4  ;;  %s286_s2 = int_to_ptr.vmem [resolvable:$true] %s285_s2 }
  0x28   :  { %124 = vmatprep.subr.mxu0 %v102_v3  ;;  %v106_v9 = vld [vmem:[#allocation8 + $0x178] sm:$0xff]  ;;  %v93_v10 = vld [vmem:[#allocation8 + $0x110] sm:$0xff]  ;;  %v103_v11 = vld [vmem:[#allocation8 + $0x160] sm:$0xff]  ;;  %s370_s28 = scalar_lea.vmem %s286_s2, 128  ;;  %p375_p2 = scmp.lt.s32.totalorder %s286_s2, %s286_s2 }
  0x29   :  { %125 = vmatpush1.msra.mxu0 %v101_v4  ;;  %194 = vmatpush1.msra.mxu1 %v106_v9  ;;  %v92_v12 = vld [vmem:[#allocation8 + $0x108] sm:$0xff]  ;;  %v90_v14 = vld [vmem:[#allocation8 + $0xf8] sm:$0xff]  ;;  %v89_v15 = vld [vmem:[#allocation8 + $0xf0] sm:$0xff]  ;;  %p371_p1 = scmp.ne.s32.totalorder %s286_s2, %s370_s28  ;;  %p376_p3 = scmp.lt.s32.totalorder %s370_s28, %s370_s28 }
  0x2a   :  { %126 = vmatprep.subr.mxu0 %v99_v5  ;;  %195 = vmatprep.subr.mxu1 %v401_v0  ;;  %v100_v13 = vld [vmem:[#allocation8 + $0x148] sm:$0xff]  ;;  %v97_v16 = vld [vmem:[#allocation8 + $0x130] sm:$0xff]  ;;  %v87_v17 = vld [vmem:[#allocation8 + $0xe0] sm:$0xff] }
  0x2b   :  { %127 = vmatpush1.msra.mxu0 %v98_v6  ;;  %196 = vmatpush1.msra.mxu1 %v103_v11  ;;  %v86_v18 = vld [vmem:[#allocation8 + $0xd8] sm:$0xff]  ;;  %v84_v20 = vld [vmem:[#allocation8 + $0xc8] sm:$0xff]  ;;  %v83_v21 = vld [vmem:[#allocation8 + $0xc0] sm:$0xff]  ;;  %p377_p4 = por %p376_p3, %p375_p2 }
  0x2c   :  { %128 = vmatprep.subr.mxu0 %v96_v7  ;;  %197 = vmatprep.subr.mxu1 %v401_v0  ;;  %v94_v19 = vld [vmem:[#allocation8 + $0x118] sm:$0xff]  ;;  %v91_v22 = vld [vmem:[#allocation8 + $0x100] sm:$0xff]  ;;  %v81_v23 = vld [vmem:[#allocation8 + $0xb0] sm:$0xff] }
  0x2d   :  { %129 = vmatpush1.msra.mxu0 %v95_v8  ;;  %198 = vmatpush1.msra.mxu1 %v100_v13  ;;  %v80_v24 = vld [vmem:[#allocation8 + $0xa8] sm:$0xff]  ;;  %v78_v26 = vld [vmem:[#allocation8 + $0x98] sm:$0xff]  ;;  %v77_v27 = vld [vmem:[#allocation8 + $0x90] sm:$0xff]  ;;  %p378_p5 = pnand %p377_p4, %p371_p1 }
  0x2e   :  { %130 = vmatprep.subr.mxu0 %v93_v10  ;;  %199 = vmatprep.subr.mxu1 %v401_v0  ;;  %v88_v25 = vld [vmem:[#allocation8 + $0xe8] sm:$0xff]  ;;  %v85_v28 = vld [vmem:[#allocation8 + $0xd0] sm:$0xff]  ;;  %v75_v30 = vld [vmem:[#allocation8 + $0x80] sm:$0xff] }
  0x2f   :  { %131 = vmatpush1.msra.mxu0 %v92_v12  ;;  %200 = vmatpush1.msra.mxu1 %v97_v16  ;;  %v54_v29 = vld [vmem:[#allocation3] sm:$0xff]  ;;  %v440_v31 = vld [vmem:[#allocation6] sm:$0xff]  ;;  %v72_v34 = vld [vmem:[#allocation8 + $0x68] sm:$0xff] }
  0x30   :  { %132 = vmatprep.subr.mxu0 %v90_v14  ;;  %201 = vmatprep.subr.mxu1 %v401_v0  ;;  %56 = vst.msk [vmem:[#allocation2 + $0x8] sm:$0xff] %vm55_vm0, %v54_v29  ;;  %v74_v32 = vld [vmem:[#allocation8 + $0x78] sm:$0xff]  ;;  %v71_v35 = vld [vmem:[#allocation8 + $0x60] sm:$0xff]  ;;  %v69_v37 = vld [vmem:[#allocation8 + $0x50] sm:$0xff] }
  0x31   :  { %133 = vmatpush1.msra.mxu0 %v89_v15  ;;  %202 = vmatpush1.msra.mxu1 %v94_v19  ;;  %v82_v33 = vld [vmem:[#allocation8 + $0xb8] sm:$0xff]  ;;  %v79_v36 = vld [vmem:[#allocation8 + $0xa0] sm:$0xff]  ;;  %v68_v38 = vld [vmem:[#allocation8 + $0x48] sm:$0xff] }
  0x32   :  { %134 = vmatprep.subr.mxu0 %v87_v17  ;;  %203 = vmatprep.subr.mxu1 %v401_v0  ;;  %v76_v39 = vld [vmem:[#allocation8 + $0x88] sm:$0xff]  ;;  %v66_v40 = vld [vmem:[#allocation8 + $0x38] sm:$0xff]  ;;  %v65_v41 = vld [vmem:[#allocation8 + $0x30] sm:$0xff] }
  0x33   :  { %135 = vmatpush1.msra.mxu0 %v86_v18  ;;  %204 = vmatpush1.msra.mxu1 %v91_v22  ;;  %v73_v42 = vld [vmem:[#allocation8 + $0x70] sm:$0xff]  ;;  %v63_v43 = vld [vmem:[#allocation8 + $0x20] sm:$0xff]  ;;  %v62_v44 = vld [vmem:[#allocation8 + $0x18] sm:$0xff] }
  0x34   :  { %136 = vmatprep.subr.mxu0 %v84_v20  ;;  %205 = vmatprep.subr.mxu1 %v401_v0  ;;  %v60_v46 = vld [vmem:[#allocation8 + $0x8] sm:$0xff]  ;;  %v70_v47 = vld [vmem:[#allocation8 + $0x58] sm:$0xff]  ;;  %v59_v48 = vld [vmem:[#allocation8] sm:$0xff] }
  0x35   :  { %137 = vmatpush1.msra.mxu0 %v83_v21  ;;  %206 = vmatpush1.msra.mxu1 %v88_v25  ;;  %v117_v49 = vld [vmem:[#allocation8 + $0x1d0] sm:$0xff]  ;;  %v67_v50 = vld [vmem:[#allocation8 + $0x40] sm:$0xff]  ;;  %v116_v51 = vld [vmem:[#allocation8 + $0x1c8] sm:$0xff] }
  0x36   :  { %138 = vmatprep.subr.mxu0 %v81_v23  ;;  %207 = vmatprep.subr.mxu1 %v401_v0  ;;  %v114_v52 = vld [vmem:[#allocation8 + $0x1b8] sm:$0xff]  ;;  %v64_v53 = vld [vmem:[#allocation8 + $0x28] sm:$0xff]  ;;  %v113_v54 = vld [vmem:[#allocation8 + $0x1b0] sm:$0xff] }
  0x37   :  { %139 = vmatpush1.msra.mxu0 %v80_v24  ;;  %208 = vmatpush1.msra.mxu1 %v85_v28  ;;  %v58_v45 = vld [vmem:[#allocation2 + $0x8] sm:$0xff]  ;;  %v111_v55 = vld [vmem:[#allocation8 + $0x1a0] sm:$0xff]  ;;  %v61_v56 = vld [vmem:[#allocation8 + $0x10] sm:$0xff] }
  0x38   :  { %140 = vmatprep.subr.mxu0 %v78_v26  ;;  %209 = vmatprep.subr.mxu1 %v401_v0  ;;  %v110_v57 = vld [vmem:[#allocation8 + $0x198] sm:$0xff]  ;;  %v108_v58 = vld [vmem:[#allocation8 + $0x188] sm:$0xff]  ;;  %v107_v60 = vld [vmem:[#allocation8 + $0x180] sm:$0xff] }
  0x39   :  { %141 = vmatpush1.msra.mxu0 %v77_v27  ;;  %210 = vmatpush1.msra.mxu1 %v82_v33  ;;  %v118_v59 = vld [vmem:[#allocation8 + $0x1d8] sm:$0xff]  ;;  %v115_v61 = vld [vmem:[#allocation8 + $0x1c0] sm:$0xff]  ;;  %v112_v62 = vld [vmem:[#allocation8 + $0x1a8] sm:$0xff] }
  0x3a   :  { %142 = vmatprep.subr.mxu0 %v75_v30  ;;  %211 = vmatprep.subr.mxu1 %v401_v0  ;;  %v109_v63 = vld [vmem:[#allocation8 + $0x190] sm:$0xff] }
  0x3b   :  { %143 = vmatpush1.msra.mxu0 %v74_v32  ;;  %212 = vmatpush1.msra.mxu1 %v79_v36 }
  0x3c   :  { %144 = vmatprep.subr.mxu0 %v72_v34  ;;  %213 = vmatprep.subr.mxu1 %v401_v0 }
  0x3d   :  { %145 = vmatpush1.msra.mxu0 %v71_v35  ;;  %214 = vmatpush1.msra.mxu1 %v76_v39 }
  0x3e   :  { %146 = vmatprep.subr.mxu0 %v69_v37  ;;  %215 = vmatprep.subr.mxu1 %v401_v0 }
  0x3f   :  { %147 = vmatpush1.msra.mxu0 %v68_v38  ;;  %216 = vmatpush1.msra.mxu1 %v73_v42 }
  0x40   :  { %148 = vmatprep.subr.mxu0 %v66_v40  ;;  %217 = vmatprep.subr.mxu1 %v401_v0 }
  0x41   :  { %149 = vmatpush1.msra.mxu0 %v65_v41  ;;  %295 = vmatprep.mubr.msk.f32.mxu0 %vm55_vm0, %v58_v45 }
  0x42   :  { %150 = vmatprep.subr.mxu0 %v63_v43  ;;  %218 = vmatpush1.msra.mxu1 %v70_v47 }
  0x43   :  { %151 = vmatpush1.msra.mxu0 %v62_v44  ;;  %219 = vmatprep.subr.mxu1 %v401_v0 }
  0x44   :  { %152 = vmatprep.subr.mxu0 %v60_v46  ;;  %220 = vmatpush1.msra.mxu1 %v67_v50 }
  0x45   :  { %153 = vmatpush1.msra.mxu0 %v59_v48  ;;  %221 = vmatprep.subr.mxu1 %v401_v0 }
  0x46   :  { %178 = vmatprep.subr.mxu0 %v117_v49  ;;  %222 = vmatpush1.msra.mxu1 %v64_v53 }
  0x47   :  { %179 = vmatpush2.msra.mxu0 %v116_v51  ;;  %223 = vmatprep.subr.mxu1 %v401_v0 }
  0x48   :  { %180 = vmatprep.subr.mxu0 %v114_v52  ;;  %224 = vmatpush1.msra.mxu1 %v61_v56 }
  0x49   :  { %181 = vmatpush2.msra.mxu0 %v113_v54  ;;  %249 = vmatprep.subr.mxu1 %v401_v0 }
  0x4a   :  { %182 = vmatprep.subr.mxu0 %v111_v55  ;;  %250 = vmatpush2.msra.mxu1 %v118_v59 }
  0x4b   :  { %183 = vmatpush2.msra.mxu0 %v110_v57  ;;  %251 = vmatprep.subr.mxu1 %v401_v0 }
  0x4c   :  { %184 = vmatprep.subr.mxu0 %v108_v58  ;;  %252 = vmatpush2.msra.mxu1 %v115_v61 }
  0x4d   :  { %185 = vmatpush2.msra.mxu0 %v107_v60  ;;  %253 = vmatprep.subr.mxu1 %v401_v0 }
  0x4e   :  { %187 = vmatmul.mubr.f32.vlgmr.msra.gmra.mxu0 %v440_v31  ;;  %296 = vmatprep.mubr.msk.f32.mxu1 %vm55_vm0, %v58_v45 }
  0x4f   :  { %254 = vmatpush2.msra.mxu1 %v112_v62 }
  0x50   :  { %255 = vmatprep.subr.mxu1 %v401_v0 }
  0x51   :  { %256 = vmatpush2.msra.mxu1 %v109_v63 }
  0x52   :  { %258 = vmatmul.mubr.f32.vlgmr.msra.gmra.mxu1 %v440_v31 }
 0x10e   :  { %v188_v1 = vpop.f32.mrf.mxu0 }
 0x10f   :  { %v263_v2 = vmul.f32 0.5, %v188_v1 }
 0x110   :  { %v190_v10 = vpop.f32.mrf.mxu0 }
 0x111   :  { %304 = vtanh.f32 %v263_v2 }
 0x112   :  { %v259_v3 = vpop.f32.mrf.mxu1 }
 0x113   :  { %v269_v4 = vadd.f32 -1.0, %v259_v3 }
 0x114   :  { %v261_v5 = vpop.f32.mrf.mxu1 }
 0x115   :  { %v270_v6 = vmul.f32 0.5, %v269_v4 }
 0x117   :  { %306 = vtanh.f32 %v270_v6 }
 0x11e   :  { %v305_v7 = vpop.eup %304 }
 0x11f   :  { %v265_v8 = vmul.f32 0.5, %v305_v7 }
 0x121   :  { %v266_v9 = vadd.f32 0.5, %v265_v8 }
 0x123   :  { %v267_v11 = vmul.f32 %v266_v9, %v190_v10 }
 0x124   :  { %v307_v12 = vpop.eup %306 }
 0x125   :  { %308 = vtanh.f32 %v267_v11  ;;  %v272_v13 = vmul.f32 0.5, %v307_v12 }
 0x127   :  { %v273_v0 = vadd.f32 0.5, %v272_v13 }
 0x132   :  { %v309_v14 = vpop.eup %308 }
 0x133   :  { %v275_v15 = vsub.f32 %v309_v14, %v440_v31 }
 0x135   :  { %v276_v16 = vmul.f32 %v275_v15, %v273_v0 }
 0x137   :  { %v277_v17 = vadd.f32 %v276_v16, %v440_v31 }
 0x139   :  { %278 = vst [vmem:[#allocation9] sm:$0xff] %v277_v17 }
 0x13a   :  { %381 = shalt.err (!%p378_p5)
}
 0x13b   :  { %288 = dma.vmem_to_hbm [thread:$0]  %s286_s2, 128, %s467_s3, [#allocation5]  }
 0x13c   :  { %394 = dma.done.wait [#allocation5], 128  }
 0x13d   :  { %395 = vsyncadd [#allocation5], 4294967168 }
 0x13e   :  { %292 = vsyncpa [#allocation4], 1 }
 0x13f   :  { %293 = vsyncpa [#allocation7], 1 }
 0x140   :  { %294 = vsyncpa [#allocation5], 1 }

// kernel: tpu_custom_call.1
= control target key start
LH: loop header
LB: loop body
LE: loop exit
PB: predicated region body
PF: predicated region fallthrough
CT: control target
= control target key end

     0   :  { %8 = vsyncpa [#allocation4], 0  ;;  %s464_s0 = inlined_call_operand.hbm [shape: f32[8,32], index: 0, kind: input, shape index: {}]   ;;  %s465_s1 = inlined_call_operand.hbm [shape: f32[8,128], index: 1, kind: input, shape index: {}]   ;;  %s466_s2 = inlined_call_operand.hbm [shape: f32[160,384], index: 2, kind: input, shape index: {}]   ;;  %s467_s3 = inlined_call_operand.hbm [shape: f32[8,128], index: 3, kind: output, shape index: {}]  }
   0x1   :  { %9 = vsyncpa [#allocation7], 0 }
   0x2   :  { %10 = vsyncpa [#allocation5], 0  ;;  %s396_s12 = smov [#allocation6]   ;;  %s397_s14 = smov [#allocation3]  }
   0x3   :  { %s27_s13 = sshll.u32 %s396_s12, 4  ;;  %s17_s15 = sshll.u32 %s397_s14, 4  ;;  %s28_s13 = int_to_ptr.vmem [resolvable:$true] %s27_s13  ;;  %s18_s15 = int_to_ptr.vmem [resolvable:$true] %s17_s15 }
   0x4   :  { %s318_s16 = scalar_lea.vmem %s28_s13, 128  ;;  %p323_p1 = scmp.lt.s32.totalorder %s28_s13, %s28_s13 }
   0x5   :  { %p319_p0 = scmp.ne.s32.totalorder %s28_s13, %s318_s16  ;;  %p324_p2 = scmp.lt.s32.totalorder %s318_s16, %s318_s16 }
   0x7   :  { %p325_p3 = por %p324_p2, %p323_p1 }
   0x9   :  { %p326_p4 = pnand %p325_p3, %p319_p0 }
   0xb   :  { %329 = shalt.err (!%p326_p4)
}
   0xc   :  { %30 = dma.hbm_to_vmem [thread:$0]  %s465_s1, 128, %s28_s13, [#allocation7]  }
   0xd   :  { %s338_s19 = scalar_lea.vmem %s18_s15, 128  ;;  %p343_p6 = scmp.lt.s32.totalorder %s18_s15, %s18_s15 }
   0xe   :  { %p339_p5 = scmp.ne.s32.totalorder %s18_s15, %s338_s19  ;;  %p344_p7 = scmp.lt.s32.totalorder %s338_s19, %s338_s19 }
  0x10   :  { %p345_p8 = por %p344_p7, %p343_p6 }
  0x12   :  { %p346_p9 = pnand %p345_p8, %p339_p5 }
  0x14   :  { %349 = shalt.err (!%p346_p9)
}
  0x15   :  { %20 = dma.hbm_to_vmem [thread:$0]  %s464_s0, 128, %s18_s15, [#allocation4]  }
  0x16   :  { %s398_s22 = smov [#allocation8]  }
  0x17   :  { %s36_s23 = sshll.u32 %s398_s22, 4  ;;  %s37_s23 = int_to_ptr.vmem [resolvable:$true] %s36_s23 }
  0x18   :  { %s358_s24 = scalar_lea.vmem %s37_s23, 7680  ;;  %p363_p11 = scmp.lt.s32.totalorder %s37_s23, %s37_s23 }
  0x19   :  { %p359_p10 = scmp.ne.s32.totalorder %s37_s23, %s358_s24  ;;  %p364_p12 = scmp.lt.s32.totalorder %s358_s24, %s358_s24 }
  0x1b   :  { %p365_p13 = por %p364_p12, %p363_p11 }
  0x1d   :  { %p366_p0 = pnand %p365_p13, %p359_p10 }
  0x1f   :  { %369 = shalt.err (!%p366_p0)
}
  0x20   :  { %s399_s1 = smov 384   ;;  %s400_s25 = smov 24  }
  0x21   :  { %42 = dma.hbm_to_vmem [thread:$0]  %s466_s2, 7680, %s37_s23, [#allocation7], %s399_s1, %s399_s1, %s400_s25  }
  0x22   :  { %390 = dma.done.wait [#allocation4], 128  }
  0x23   :  { %391 = vsyncadd [#allocation4], 4294967168 }
  0x24   :  { %392 = dma.done.wait [#allocation7], 7808  }
  0x25   :  { %393 = vsyncadd [#allocation7], 4294959488  ;;  %v401_v0 = vmov 0.0   ;;  %v105_v1 = vld [vmem:[#allocation8 + $0x170] sm:$0xff]  ;;  %v104_v2 = vld [vmem:[#allocation8 + $0x168] sm:$0xff]  ;;  %vm55_vm0 = vcmask 261120  }
  0x26   :  { %193 = vmatprep.subr.mxu1 %v401_v0  ;;  %v102_v3 = vld [vmem:[#allocation8 + $0x158] sm:$0xff]  ;;  %122 = vmatprep.subr.mxu0 %v105_v1  ;;  %v101_v4 = vld [vmem:[#allocation8 + $0x150] sm:$0xff]  ;;  %v99_v5 = vld [vmem:[#allocation8 + $0x140] sm:$0xff]  ;;  %s402_s0 = smov [#allocation9]  }
  0x27   :  { %123 = vmatpush1.msra.mxu0 %v104_v2  ;;  %v98_v6 = vld [vmem:[#allocation8 + $0x138] sm:$0xff]  ;;  %v96_v7 = vld [vmem:[#allocation8 + $0x128] sm:$0xff]  ;;  %v95_v8 = vld [vmem:[#allocation8 + $0x120] sm:$0xff]  ;;  %s285_s2 = sshll.u32 %s402_s0, 4  ;;  %s286_s2 = int_to_ptr.vmem [resolvable:$true] %s285_s2 }
  0x28   :  { %124 = vmatprep.subr.mxu0 %v102_v3  ;;  %v106_v9 = vld [vmem:[#allocation8 + $0x178] sm:$0xff]  ;;  %v93_v10 = vld [vmem:[#allocation8 + $0x110] sm:$0xff]  ;;  %v103_v11 = vld [vmem:[#allocation8 + $0x160] sm:$0xff]  ;;  %s370_s28 = scalar_lea.vmem %s286_s2, 128  ;;  %p375_p2 = scmp.lt.s32.totalorder %s286_s2, %s286_s2 }
  0x29   :  { %125 = vmatpush1.msra.mxu0 %v101_v4  ;;  %194 = vmatpush1.msra.mxu1 %v106_v9  ;;  %v92_v12 = vld [vmem:[#allocation8 + $0x108] sm:$0xff]  ;;  %v90_v14 = vld [vmem:[#allocation8 + $0xf8] sm:$0xff]  ;;  %v89_v15 = vld [vmem:[#allocation8 + $0xf0] sm:$0xff]  ;;  %p371_p1 = scmp.ne.s32.totalorder %s286_s2, %s370_s28  ;;  %p376_p3 = scmp.lt.s32.totalorder %s370_s28, %s370_s28 }
  0x2a   :  { %126 = vmatprep.subr.mxu0 %v99_v5  ;;  %195 = vmatprep.subr.mxu1 %v401_v0  ;;  %v100_v13 = vld [vmem:[#allocation8 + $0x148] sm:$0xff]  ;;  %v97_v16 = vld [vmem:[#allocation8 + $0x130] sm:$0xff]  ;;  %v87_v17 = vld [vmem:[#allocation8 + $0xe0] sm:$0xff] }
  0x2b   :  { %127 = vmatpush1.msra.mxu0 %v98_v6  ;;  %196 = vmatpush1.msra.mxu1 %v103_v11  ;;  %v86_v18 = vld [vmem:[#allocation8 + $0xd8] sm:$0xff]  ;;  %v84_v20 = vld [vmem:[#allocation8 + $0xc8] sm:$0xff]  ;;  %v83_v21 = vld [vmem:[#allocation8 + $0xc0] sm:$0xff]  ;;  %p377_p4 = por %p376_p3, %p375_p2 }
  0x2c   :  { %128 = vmatprep.subr.mxu0 %v96_v7  ;;  %197 = vmatprep.subr.mxu1 %v401_v0  ;;  %v94_v19 = vld [vmem:[#allocation8 + $0x118] sm:$0xff]  ;;  %v91_v22 = vld [vmem:[#allocation8 + $0x100] sm:$0xff]  ;;  %v81_v23 = vld [vmem:[#allocation8 + $0xb0] sm:$0xff] }
  0x2d   :  { %129 = vmatpush1.msra.mxu0 %v95_v8  ;;  %198 = vmatpush1.msra.mxu1 %v100_v13  ;;  %v80_v24 = vld [vmem:[#allocation8 + $0xa8] sm:$0xff]  ;;  %v78_v26 = vld [vmem:[#allocation8 + $0x98] sm:$0xff]  ;;  %v77_v27 = vld [vmem:[#allocation8 + $0x90] sm:$0xff]  ;;  %p378_p5 = pnand %p377_p4, %p371_p1 }
  0x2e   :  { %130 = vmatprep.subr.mxu0 %v93_v10  ;;  %199 = vmatprep.subr.mxu1 %v401_v0  ;;  %v88_v25 = vld [vmem:[#allocation8 + $0xe8] sm:$0xff]  ;;  %v85_v28 = vld [vmem:[#allocation8 + $0xd0] sm:$0xff]  ;;  %v75_v30 = vld [vmem:[#allocation8 + $0x80] sm:$0xff] }
  0x2f   :  { %131 = vmatpush1.msra.mxu0 %v92_v12  ;;  %200 = vmatpush1.msra.mxu1 %v97_v16  ;;  %v54_v29 = vld [vmem:[#allocation3] sm:$0xff]  ;;  %v440_v31 = vld [vmem:[#allocation6] sm:$0xff]  ;;  %v72_v34 = vld [vmem:[#allocation8 + $0x68] sm:$0xff] }
  0x30   :  { %132 = vmatprep.subr.mxu0 %v90_v14  ;;  %201 = vmatprep.subr.mxu1 %v401_v0  ;;  %56 = vst.msk [vmem:[#allocation2 + $0x8] sm:$0xff] %vm55_vm0, %v54_v29  ;;  %v74_v32 = vld [vmem:[#allocation8 + $0x78] sm:$0xff]  ;;  %v71_v35 = vld [vmem:[#allocation8 + $0x60] sm:$0xff]  ;;  %v69_v37 = vld [vmem:[#allocation8 + $0x50] sm:$0xff] }
  0x31   :  { %133 = vmatpush1.msra.mxu0 %v89_v15  ;;  %202 = vmatpush1.msra.mxu1 %v94_v19  ;;  %v82_v33 = vld [vmem:[#allocation8 + $0xb8] sm:$0xff]  ;;  %v79_v36 = vld [vmem:[#allocation8 + $0xa0] sm:$0xff]  ;;  %v68_v38 = vld [vmem:[#allocation8 + $0x48] sm:$0xff] }
  0x32   :  { %134 = vmatprep.subr.mxu0 %v87_v17  ;;  %203 = vmatprep.subr.mxu1 %v401_v0  ;;  %v76_v39 = vld [vmem:[#allocation8 + $0x88] sm:$0xff]  ;;  %v66_v40 = vld [vmem:[#allocation8 + $0x38] sm:$0xff]  ;;  %v65_v41 = vld [vmem:[#allocation8 + $0x30] sm:$0xff] }
  0x33   :  { %135 = vmatpush1.msra.mxu0 %v86_v18  ;;  %204 = vmatpush1.msra.mxu1 %v91_v22  ;;  %v73_v42 = vld [vmem:[#allocation8 + $0x70] sm:$0xff]  ;;  %v63_v43 = vld [vmem:[#allocation8 + $0x20] sm:$0xff]  ;;  %v62_v44 = vld [vmem:[#allocation8 + $0x18] sm:$0xff] }
  0x34   :  { %136 = vmatprep.subr.mxu0 %v84_v20  ;;  %205 = vmatprep.subr.mxu1 %v401_v0  ;;  %v60_v46 = vld [vmem:[#allocation8 + $0x8] sm:$0xff]  ;;  %v70_v47 = vld [vmem:[#allocation8 + $0x58] sm:$0xff]  ;;  %v59_v48 = vld [vmem:[#allocation8] sm:$0xff] }
  0x35   :  { %137 = vmatpush1.msra.mxu0 %v83_v21  ;;  %206 = vmatpush1.msra.mxu1 %v88_v25  ;;  %v117_v49 = vld [vmem:[#allocation8 + $0x1d0] sm:$0xff]  ;;  %v67_v50 = vld [vmem:[#allocation8 + $0x40] sm:$0xff]  ;;  %v116_v51 = vld [vmem:[#allocation8 + $0x1c8] sm:$0xff] }
  0x36   :  { %138 = vmatprep.subr.mxu0 %v81_v23  ;;  %207 = vmatprep.subr.mxu1 %v401_v0  ;;  %v114_v52 = vld [vmem:[#allocation8 + $0x1b8] sm:$0xff]  ;;  %v64_v53 = vld [vmem:[#allocation8 + $0x28] sm:$0xff]  ;;  %v113_v54 = vld [vmem:[#allocation8 + $0x1b0] sm:$0xff] }
  0x37   :  { %139 = vmatpush1.msra.mxu0 %v80_v24  ;;  %208 = vmatpush1.msra.mxu1 %v85_v28  ;;  %v58_v45 = vld [vmem:[#allocation2 + $0x8] sm:$0xff]  ;;  %v111_v55 = vld [vmem:[#allocation8 + $0x1a0] sm:$0xff]  ;;  %v61_v56 = vld [vmem:[#allocation8 + $0x10] sm:$0xff] }
  0x38   :  { %140 = vmatprep.subr.mxu0 %v78_v26  ;;  %209 = vmatprep.subr.mxu1 %v401_v0  ;;  %v110_v57 = vld [vmem:[#allocation8 + $0x198] sm:$0xff]  ;;  %v108_v58 = vld [vmem:[#allocation8 + $0x188] sm:$0xff]  ;;  %v107_v60 = vld [vmem:[#allocation8 + $0x180] sm:$0xff] }
  0x39   :  { %141 = vmatpush1.msra.mxu0 %v77_v27  ;;  %210 = vmatpush1.msra.mxu1 %v82_v33  ;;  %v118_v59 = vld [vmem:[#allocation8 + $0x1d8] sm:$0xff]  ;;  %v115_v61 = vld [vmem:[#allocation8 + $0x1c0] sm:$0xff]  ;;  %v112_v62 = vld [vmem:[#allocation8 + $0x1a8] sm:$0xff] }
  0x3a   :  { %142 = vmatprep.subr.mxu0 %v75_v30  ;;  %211 = vmatprep.subr.mxu1 %v401_v0  ;;  %v109_v63 = vld [vmem:[#allocation8 + $0x190] sm:$0xff] }
  0x3b   :  { %143 = vmatpush1.msra.mxu0 %v74_v32  ;;  %212 = vmatpush1.msra.mxu1 %v79_v36 }
  0x3c   :  { %144 = vmatprep.subr.mxu0 %v72_v34  ;;  %213 = vmatprep.subr.mxu1 %v401_v0 }
  0x3d   :  { %145 = vmatpush1.msra.mxu0 %v71_v35  ;;  %214 = vmatpush1.msra.mxu1 %v76_v39 }
  0x3e   :  { %146 = vmatprep.subr.mxu0 %v69_v37  ;;  %215 = vmatprep.subr.mxu1 %v401_v0 }
  0x3f   :  { %147 = vmatpush1.msra.mxu0 %v68_v38  ;;  %216 = vmatpush1.msra.mxu1 %v73_v42 }
  0x40   :  { %148 = vmatprep.subr.mxu0 %v66_v40  ;;  %217 = vmatprep.subr.mxu1 %v401_v0 }
  0x41   :  { %149 = vmatpush1.msra.mxu0 %v65_v41  ;;  %295 = vmatprep.mubr.msk.f32.mxu0 %vm55_vm0, %v58_v45 }
  0x42   :  { %150 = vmatprep.subr.mxu0 %v63_v43  ;;  %218 = vmatpush1.msra.mxu1 %v70_v47 }
  0x43   :  { %151 = vmatpush1.msra.mxu0 %v62_v44  ;;  %219 = vmatprep.subr.mxu1 %v401_v0 }
  0x44   :  { %152 = vmatprep.subr.mxu0 %v60_v46  ;;  %220 = vmatpush1.msra.mxu1 %v67_v50 }
  0x45   :  { %153 = vmatpush1.msra.mxu0 %v59_v48  ;;  %221 = vmatprep.subr.mxu1 %v401_v0 }
  0x46   :  { %178 = vmatprep.subr.mxu0 %v117_v49  ;;  %222 = vmatpush1.msra.mxu1 %v64_v53 }
  0x47   :  { %179 = vmatpush2.msra.mxu0 %v116_v51  ;;  %223 = vmatprep.subr.mxu1 %v401_v0 }
  0x48   :  { %180 = vmatprep.subr.mxu0 %v114_v52  ;;  %224 = vmatpush1.msra.mxu1 %v61_v56 }
  0x49   :  { %181 = vmatpush2.msra.mxu0 %v113_v54  ;;  %249 = vmatprep.subr.mxu1 %v401_v0 }
  0x4a   :  { %182 = vmatprep.subr.mxu0 %v111_v55  ;;  %250 = vmatpush2.msra.mxu1 %v118_v59 }
  0x4b   :  { %183 = vmatpush2.msra.mxu0 %v110_v57  ;;  %251 = vmatprep.subr.mxu1 %v401_v0 }
  0x4c   :  { %184 = vmatprep.subr.mxu0 %v108_v58  ;;  %252 = vmatpush2.msra.mxu1 %v115_v61 }
  0x4d   :  { %185 = vmatpush2.msra.mxu0 %v107_v60  ;;  %253 = vmatprep.subr.mxu1 %v401_v0 }
  0x4e   :  { %187 = vmatmul.mubr.f32.vlgmr.msra.gmra.mxu0 %v440_v31  ;;  %296 = vmatprep.mubr.msk.f32.mxu1 %vm55_vm0, %v58_v45 }
  0x4f   :  { %254 = vmatpush2.msra.mxu1 %v112_v62 }
  0x50   :  { %255 = vmatprep.subr.mxu1 %v401_v0 }
  0x51   :  { %256 = vmatpush2.msra.mxu1 %v109_v63 }
  0x52   :  { %258 = vmatmul.mubr.f32.vlgmr.msra.gmra.mxu1 %v440_v31 }
 0x10e   :  { %v188_v1 = vpop.f32.mrf.mxu0 }
 0x10f   :  { %v263_v2 = vmul.f32 0.5, %v188_v1 }
 0x110   :  { %v190_v10 = vpop.f32.mrf.mxu0 }
 0x111   :  { %304 = vtanh.f32 %v263_v2 }
 0x112   :  { %v259_v3 = vpop.f32.mrf.mxu1 }
 0x113   :  { %v269_v4 = vadd.f32 -1.0, %v259_v3 }
 0x114   :  { %v261_v5 = vpop.f32.mrf.mxu1 }
 0x115   :  { %v270_v6 = vmul.f32 0.5, %v269_v4 }
 0x117   :  { %306 = vtanh.f32 %v270_v6 }
 0x11e   :  { %v305_v7 = vpop.eup %304 }
 0x11f   :  { %v265_v8 = vmul.f32 0.5, %v305_v7 }
 0x121   :  { %v266_v9 = vadd.f32 0.5, %v265_v8 }
 0x123   :  { %v267_v11 = vmul.f32 %v266_v9, %v190_v10 }
 0x124   :  { %v307_v12 = vpop.eup %306 }
 0x125   :  { %308 = vtanh.f32 %v267_v11  ;;  %v272_v13 = vmul.f32 0.5, %v307_v12 }
 0x127   :  { %v273_v0 = vadd.f32 0.5, %v272_v13 }
 0x132   :  { %v309_v14 = vpop.eup %308 }
 0x133   :  { %v275_v15 = vsub.f32 %v309_v14, %v440_v31 }
 0x135   :  { %v276_v16 = vmul.f32 %v275_v15, %v273_v0 }
 0x137   :  { %v277_v17 = vadd.f32 %v276_v16, %v440_v31 }
 0x139   :  { %278 = vst [vmem:[#allocation9] sm:$0xff] %v277_v17 }
 0x13a   :  { %381 = shalt.err (!%p378_p5)
}
 0x13b   :  { %288 = dma.vmem_to_hbm [thread:$0]  %s286_s2, 128, %s467_s3, [#allocation5]  }
 0x13c   :  { %394 = dma.done.wait [#allocation5], 128  }
 0x13d   :  { %395 = vsyncadd [#allocation5], 4294967168 }
 0x13e   :  { %292 = vsyncpa [#allocation4], 1 }
 0x13f   :  { %293 = vsyncpa [#allocation7], 1 }
 0x140   :  { %294 = vsyncpa [#allocation5], 1 }

</bundles_post_ra>
